<compile_context>
chip_gen: v5e
topology: v5e:2x2
jax: 0.10.0
libtpu: 0.0.40
codegen_flags: <defaults>
</compile_context>

<pallas_src>
import functools

import jax
import jax.numpy as jnp
from jax.experimental import pallas as pl
from jax.experimental.pallas import tpu as pltpu

LANE = 128  # TPU lane width; hidden/act padded to this for in-kernel compute.


def _round_up(x, m):
    return (x + m - 1) // m * m


def actor_kernel(obs_ref, w1_ref, b1_ref, w2_ref, b2_ref, w3_ref, b3_ref,
                 out_ref, *, act_bound):
    # One batch tile per grid step: three bf16 MXU matmuls with f32
    # accumulation, VPU ReLU, EUP tanh, act_bound scale, narrow store.
    x = obs_ref[...]                                            # already bf16

    h1 = jnp.dot(x, w1_ref[...], preferred_element_type=jnp.float32) + b1_ref[...]
    h1 = jnp.maximum(h1, 0.0)                                   # ReLU

    h2 = jnp.dot(h1.astype(jnp.bfloat16), w2_ref[...],
                 preferred_element_type=jnp.float32) + b2_ref[...]
    h2 = jnp.maximum(h2, 0.0)                                   # ReLU

    z = jnp.dot(h2.astype(jnp.bfloat16), w3_ref[...],
                preferred_element_type=jnp.float32) + b3_ref[...]
    act = jnp.tanh(z) * act_bound                               # (tile_b, 128)

    # Narrow HBM writeback: only the real action columns leave VMEM.
    out_ref[...] = act[:, :out_ref.shape[1]].astype(out_ref.dtype)


def actor_forward(obs, params, act_bound, act_dim, *, tile_b=256):
    """Fused Actor MLP: batch-tiled grid, VMEM-resident padded weights,
    narrow (act_dim-wide) HBM output."""
    w1, b1, w2, b2, w3, b3 = params
    batch, obs_dim = obs.shape
    h_pad = w1.shape[1]

    # Batch tile: multiple of 8 (sublane rule), no larger than the batch.
    tile_b = max(8, _round_up(min(tile_b, batch), 8))
    # v7x has 2 TensorCores sharing the ("parallel",) grid axis: if the whole
    # batch fits in one tile, split it so both cores get work.
    if batch > 8 and pl.cdiv(batch, tile_b) < 2:
        tile_b = max(8, _round_up(pl.cdiv(batch, 2), 8))

    batch_pad = _round_up(batch, tile_b)

    # Pre-cast obs to bf16 (halves obs DMA, removes per-step VPU cast).
    obs_bf16 = obs.astype(jnp.bfloat16)
    if batch_pad != batch:
        obs_bf16 = jnp.pad(obs_bf16, ((0, batch_pad - batch), (0, 0)))

    grid = (batch_pad // tile_b,)
    kernel = functools.partial(actor_kernel, act_bound=float(act_bound))

    const = lambda i: (0, 0)  # weights/biases: same block every step (resident)

    # Advisory cost hint for XLA scheduling around the custom call.
    flops = 2 * batch_pad * (obs_dim * h_pad + h_pad * h_pad + h_pad * LANE)
    bytes_accessed = (
        batch_pad * obs_dim * 2                     # obs (bf16) read
        + batch_pad * act_dim * 4                   # narrow f32 output write
        + sum(int(p.size) * p.dtype.itemsize for p in params)
    )
    cost = pl.CostEstimate(flops=flops,
                           transcendentals=batch_pad * LANE,     # tanh
                           bytes_accessed=bytes_accessed)

    out = pl.pallas_call(
        kernel,
        out_shape=jax.ShapeDtypeStruct((batch_pad, act_dim), jnp.float32),
        grid=grid,
        in_specs=[
            pl.BlockSpec((tile_b, obs_dim), lambda i: (i, 0)),  # obs tile
            pl.BlockSpec(w1.shape, const),
            pl.BlockSpec(b1.shape, const),
            pl.BlockSpec(w2.shape, const),
            pl.BlockSpec(b2.shape, const),
            pl.BlockSpec(w3.shape, const),
            pl.BlockSpec(b3.shape, const),
        ],
        out_specs=pl.BlockSpec((tile_b, act_dim), lambda i: (i, 0)),
        compiler_params=pltpu.CompilerParams(
            dimension_semantics=("parallel",),   # megacore sharding on v7x
            # Working set even at tile_b=4096 stays well under 32 MiB:
            # weights ~68 KiB (resident) + 2x double-buffered in/out tiles.
            vmem_limit_bytes=32 * 1024 * 1024,
        ),
        cost_estimate=cost,
    )(obs_bf16, w1, b1, w2, b2, w3, b3)

    # Columns are already exact; only strip batch-row padding if any.
    return out if batch_pad == batch else out[:batch]


def init_actor_params(key, obs_dim, act_dim, hidden_size,
                      weight_dtype=jnp.bfloat16):
    """nn.Linear-style init U(-1/sqrt(fan_in), 1/sqrt(fan_in)).

    Weights are returned pre-transposed to (in_dim, out_dim), zero-padded so
    hidden/act dims hit the 128-lane width (lane-dense in-kernel compute),
    and cast to bf16 for the MXU.  Biases stay f32, shape (1, padded_out).
    """
    h_pad = _round_up(hidden_size, LANE)
    a_pad = _round_up(act_dim, LANE)

    def linear(k, fan_in, fan_out, in_pad, out_pad):
        kw, kb = jax.random.split(k)
        bound = 1.0 / jnp.sqrt(fan_in)
        w = jax.random.uniform(kw, (fan_in, fan_out), jnp.float32, -bound, bound)
        b = jax.random.uniform(kb, (1, fan_out), jnp.float32, -bound, bound)
        w = jnp.pad(w, ((0, in_pad - fan_in), (0, out_pad - fan_out)))
        b = jnp.pad(b, ((0, 0), (0, out_pad - fan_out)))
        return w.astype(weight_dtype), b

    k1, k2, k3 = jax.random.split(key, 3)
    w1, b1 = linear(k1, obs_dim, hidden_size, obs_dim, h_pad)
    w2, b2 = linear(k2, hidden_size, hidden_size, h_pad, h_pad)
    w3, b3 = linear(k3, hidden_size, act_dim, h_pad, a_pad)
    return (w1, b1, w2, b2, w3, b3)


def actor_reference(obs, params, act_bound, act_dim):
    """Precision-matched reference (same bf16-weight / f32-accum path)."""
    w1, b1, w2, b2, w3, b3 = params
    x = obs.astype(jnp.bfloat16)
    h1 = jnp.maximum(jnp.dot(x, w1, preferred_element_type=jnp.float32) + b1, 0.0)
    h2 = jnp.maximum(jnp.dot(h1.astype(jnp.bfloat16), w2,
                             preferred_element_type=jnp.float32) + b2, 0.0)
    z = jnp.tanh(jnp.dot(h2.astype(jnp.bfloat16), w3,
                         preferred_element_type=jnp.float32) + b3)
    return (z * act_bound)[:, :act_dim]


if __name__ == "__main__":
    obs_dim, act_dim, hidden_size, act_bound = 16, 4, 32, 2.0
    batch = 80   # default tile clamps to 80 -> split to 40 -> grid = (2,)

    key = jax.random.PRNGKey(0)
    k_obs, k_params = jax.random.split(key)

    obs = jax.random.normal(k_obs, (batch, obs_dim), dtype=jnp.float32)
    params = init_actor_params(k_params, obs_dim, act_dim, hidden_size)

    out = actor_forward(obs, params, act_bound, act_dim)
    out = jax.block_until_ready(out)

    ref = actor_reference(obs, params, act_bound, act_dim)
    assert out.shape == (batch, act_dim), out.shape
    assert jnp.allclose(out, ref, atol=1e-3, rtol=1e-3), (
        "mismatch vs reference: max abs err = "
        f"{float(jnp.max(jnp.abs(out - ref)))}"
    )

    # Also exercise a batch that does not divide the tile (tail padding path).
    obs2 = jax.random.normal(k_obs, (50, obs_dim), dtype=jnp.float32)
    out2 = jax.block_until_ready(
        actor_forward(obs2, params, act_bound, act_dim, tile_b=32))
    ref2 = actor_reference(obs2, params, act_bound, act_dim)
    assert out2.shape == (50, act_dim)
    assert jnp.allclose(out2, ref2, atol=1e-3, rtol=1e-3)

    print("KERNEL_OK")
</pallas_src>

<mosaic_0001>
module attributes {stable_mosaic.version = 11 : i64} {
  func.func @actor_kernel(%arg0: i32, %arg1: memref<40x16xbf16, #tpu.memory_space<vmem>>, %arg2: memref<16x128xbf16, #tpu.memory_space<vmem>>, %arg3: memref<1x128xf32, #tpu.memory_space<vmem>>, %arg4: memref<128x128xbf16, #tpu.memory_space<vmem>>, %arg5: memref<1x128xf32, #tpu.memory_space<vmem>>, %arg6: memref<128x128xbf16, #tpu.memory_space<vmem>>, %arg7: memref<1x128xf32, #tpu.memory_space<vmem>>, %arg8: memref<40x4xf32, #tpu.memory_space<vmem>>) attributes {dimension_semantics = [#tpu.dimension_semantics<parallel>], iteration_bounds = array<i64: 2>, scalar_prefetch = 0 : i64, scratch_operands = 0 : i64, tpu.core_type = #tpu.core_type<tc>, window_params = [{transform_indices = @transform_0, window_bounds = array<i64: 40, 16>}, {pipeline_mode = #tpu.pipeline_mode<synchronous>, transform_indices = @transform_1, window_bounds = array<i64: 16, 128>}, {pipeline_mode = #tpu.pipeline_mode<synchronous>, transform_indices = @transform_2, window_bounds = array<i64: 1, 128>}, {pipeline_mode = #tpu.pipeline_mode<synchronous>, transform_indices = @transform_3, window_bounds = array<i64: 128, 128>}, {pipeline_mode = #tpu.pipeline_mode<synchronous>, transform_indices = @transform_4, window_bounds = array<i64: 1, 128>}, {pipeline_mode = #tpu.pipeline_mode<synchronous>, transform_indices = @transform_5, window_bounds = array<i64: 128, 128>}, {pipeline_mode = #tpu.pipeline_mode<synchronous>, transform_indices = @transform_6, window_bounds = array<i64: 1, 128>}, {transform_indices = @transform_7, window_bounds = array<i64: 40, 4>}]} {
    %c0 = arith.constant 0 : index
    %c0_0 = arith.constant 0 : index
    %0 = vector.load %arg1[%c0, %c0_0] : memref<40x16xbf16, #tpu.memory_space<vmem>>, vector<40x16xbf16>
    %c0_1 = arith.constant 0 : index
    %c0_2 = arith.constant 0 : index
    %1 = vector.load %arg2[%c0_1, %c0_2] : memref<16x128xbf16, #tpu.memory_space<vmem>>, vector<16x128xbf16>
    %cst = arith.constant dense<0.000000e+00> : vector<40x128xf32>
    %2 = tpu.matmul %0, %1, %cst {dimension_numbers = #tpu.dot_dimension_numbers<[1], [0], [0], [1], [0, 0, 1, 1], [], []>} : vector<40x16xbf16>, vector<16x128xbf16>, vector<40x128xf32> -> vector<40x128xf32>
    %c0_3 = arith.constant 0 : index
    %c0_4 = arith.constant 0 : index
    %3 = vector.load %arg3[%c0_3, %c0_4] : memref<1x128xf32, #tpu.memory_space<vmem>>, vector<1x128xf32>
    %4 = vector.broadcast %3 : vector<1x128xf32> to vector<40x128xf32>
    %5 = arith.addf %2, %4 : vector<40x128xf32>
    %cst_5 = arith.constant 0.000000e+00 : f32
    %6 = vector.broadcast %cst_5 : f32 to vector<40x128xf32>
    %7 = arith.maximumf %5, %6 : vector<40x128xf32>
    %8 = arith.truncf %7 : vector<40x128xf32> to vector<40x128xbf16>
    %c0_6 = arith.constant 0 : index
    %c0_7 = arith.constant 0 : index
    %9 = vector.load %arg4[%c0_6, %c0_7] : memref<128x128xbf16, #tpu.memory_space<vmem>>, vector<128x128xbf16>
    %cst_8 = arith.constant dense<0.000000e+00> : vector<40x128xf32>
    %10 = tpu.matmul %8, %9, %cst_8 {dimension_numbers = #tpu.dot_dimension_numbers<[1], [0], [0], [1], [0, 0, 1, 1], [], []>} : vector<40x128xbf16>, vector<128x128xbf16>, vector<40x128xf32> -> vector<40x128xf32>
    %c0_9 = arith.constant 0 : index
    %c0_10 = arith.constant 0 : index
    %11 = vector.load %arg5[%c0_9, %c0_10] : memref<1x128xf32, #tpu.memory_space<vmem>>, vector<1x128xf32>
    %12 = vector.broadcast %11 : vector<1x128xf32> to vector<40x128xf32>
    %13 = arith.addf %10, %12 : vector<40x128xf32>
    %cst_11 = arith.constant 0.000000e+00 : f32
    %14 = vector.broadcast %cst_11 : f32 to vector<40x128xf32>
    %15 = arith.maximumf %13, %14 : vector<40x128xf32>
    %16 = arith.truncf %15 : vector<40x128xf32> to vector<40x128xbf16>
    %c0_12 = arith.constant 0 : index
    %c0_13 = arith.constant 0 : index
    %17 = vector.load %arg6[%c0_12, %c0_13] : memref<128x128xbf16, #tpu.memory_space<vmem>>, vector<128x128xbf16>
    %cst_14 = arith.constant dense<0.000000e+00> : vector<40x128xf32>
    %18 = tpu.matmul %16, %17, %cst_14 {dimension_numbers = #tpu.dot_dimension_numbers<[1], [0], [0], [1], [0, 0, 1, 1], [], []>} : vector<40x128xbf16>, vector<128x128xbf16>, vector<40x128xf32> -> vector<40x128xf32>
    %c0_15 = arith.constant 0 : index
    %c0_16 = arith.constant 0 : index
    %19 = vector.load %arg7[%c0_15, %c0_16] : memref<1x128xf32, #tpu.memory_space<vmem>>, vector<1x128xf32>
    %20 = vector.broadcast %19 : vector<1x128xf32> to vector<40x128xf32>
    %21 = arith.addf %18, %20 : vector<40x128xf32>
    %22 = math.tanh %21 : vector<40x128xf32>
    %cst_17 = arith.constant 2.000000e+00 : f32
    %23 = vector.broadcast %cst_17 : f32 to vector<40x128xf32>
    %24 = arith.mulf %22, %23 : vector<40x128xf32>
    %25 = vector.extract_strided_slice %24 {offsets = [0, 0], sizes = [40, 4], strides = [1, 1]} : vector<40x128xf32> to vector<40x4xf32>
    %c0_18 = arith.constant 0 : index
    %c0_19 = arith.constant 0 : index
    %26 = vector.load %arg8[%c0_18, %c0_19] : memref<40x4xf32, #tpu.memory_space<vmem>>, vector<40x4xf32>
    tpu.vector_store %arg8[%c0_18, %c0_19], %25 {strides = array<i32>} : memref<40x4xf32, #tpu.memory_space<vmem>>, vector<40x4xf32>,
    return
  }
  func.func @transform_0(%arg0: i32) -> (i32, i32) {
    %c0_i32 = arith.constant 0 : i32
    %c0_i32_0 = arith.constant 0 : i32
    return %arg0, %c0_i32 : i32, i32
  }
  func.func @transform_1(%arg0: i32) -> (i32, i32) {
    %c0_i32 = arith.constant 0 : i32
    %c0_i32_0 = arith.constant 0 : i32
    %c0_i32_1 = arith.constant 0 : i32
    return %c0_i32, %c0_i32_0 : i32, i32
  }
  func.func @transform_2(%arg0: i32) -> (i32, i32) {
    %c0_i32 = arith.constant 0 : i32
    %c0_i32_0 = arith.constant 0 : i32
    %c0_i32_1 = arith.constant 0 : i32
    return %c0_i32, %c0_i32_0 : i32, i32
  }
  func.func @transform_3(%arg0: i32) -> (i32, i32) {
    %c0_i32 = arith.constant 0 : i32
    %c0_i32_0 = arith.constant 0 : i32
    %c0_i32_1 = arith.constant 0 : i32
    return %c0_i32, %c0_i32_0 : i32, i32
  }
  func.func @transform_4(%arg0: i32) -> (i32, i32) {
    %c0_i32 = arith.constant 0 : i32
    %c0_i32_0 = arith.constant 0 : i32
    %c0_i32_1 = arith.constant 0 : i32
    return %c0_i32, %c0_i32_0 : i32, i32
  }
  func.func @transform_5(%arg0: i32) -> (i32, i32) {
    %c0_i32 = arith.constant 0 : i32
    %c0_i32_0 = arith.constant 0 : i32
    %c0_i32_1 = arith.constant 0 : i32
    return %c0_i32, %c0_i32_0 : i32, i32
  }
  func.func @transform_6(%arg0: i32) -> (i32, i32) {
    %c0_i32 = arith.constant 0 : i32
    %c0_i32_0 = arith.constant 0 : i32
    %c0_i32_1 = arith.constant 0 : i32
    return %c0_i32, %c0_i32_0 : i32, i32
  }
  func.func @transform_7(%arg0: i32) -> (i32, i32) {
    %c0_i32 = arith.constant 0 : i32
    %c0_i32_0 = arith.constant 0 : i32
    return %arg0, %c0_i32 : i32, i32
  }
}

</mosaic_0001>

<bundles_post_ra>
// kernel: tpu_custom_call.1
= control target key start
LH: loop header
LB: loop body
LE: loop exit
PB: predicated region body
PF: predicated region fallthrough
CT: control target
= control target key end

     0   :  { %12 = vsyncpa [#allocation3], 0  ;;  %s1024_s0 = inlined_call_operand.vmem [shape: bf16[80,16], index: 0, kind: input, shape index: {}]   ;;  %s1025_s1 = inlined_call_operand.vmem [shape: bf16[16,128], index: 1, kind: input, shape index: {}]   ;;  %s1026_s2 = inlined_call_operand.vmem [shape: f32[1,128], index: 2, kind: input, shape index: {}]   ;;  %s1027_s3 = inlined_call_operand.hbm [shape: bf16[128,128], index: 3, kind: input, shape index: {}]   ;;  %s1028_s4 = inlined_call_operand.vmem [shape: f32[1,128], index: 4, kind: input, shape index: {}]   ;;  %s1029_s5 = inlined_call_operand.hbm [shape: bf16[128,128], index: 5, kind: input, shape index: {}]   ;;  %s1030_s6 = inlined_call_operand.vmem [shape: f32[1,128], index: 6, kind: input, shape index: {}]   ;;  %s1031_s7 = inlined_call_operand.vmem [shape: f32[80,4], index: 7, kind: output, shape index: {}]  }
   0x1   :  { %13 = vsyncpa [#allocation5], 0  ;;  %s955_s24 = smov 0  }
   0x2 LB: > { %s219_s27 = sshll.u32 %s1027_s3, 4  ;;  %s672_s28 = sadd.s32 4294967295, %s909_s24   ;;  %s909_s24 = sphi %s955_s24, %s19_s24   ;;  %s220_s27 = int_to_ptr.hbm [resolvable:$true] %s219_s27 }
   0x3   : > { %p674_p0 = scmp.ge.s32.totalorder %s909_s24, 1  ;;  %p202_p1 = scmp.lt.s32.totalorder %s909_s24, 3 }
   0x4   : > { %p966_p2 = scmp.eq.s32.totalorder %s672_s28, 0  ;;  %s911_s8 = smov [#allocation2]  }
   0x5   : > { %p970_p3 = pnand %p674_p0, %p202_p1  ;;  %s221_s9 = sshll.u32 %s911_s8, 4  ;;  %s222_s9 = int_to_ptr.vmem [resolvable:$true] %s221_s9 }
   0x6   : > { %s236_s12 = sshll.u32 %s1029_s5, 4  ;;  %s912_s13 = smov [#allocation4]   ;;  %s237_s12 = int_to_ptr.hbm [resolvable:$true] %s236_s12 }
   0x7   : > { %p799_p4 = pneg %p970_p3  ;;  %s238_s14 = sshll.u32 %s912_s13, 4  ;;  %s239_s14 = int_to_ptr.vmem [resolvable:$true] %s238_s14 }
   0x8   : > { %s913_s15 = smov 64   ;;  %s914_s16 = smov 4  }
   0x9   : > { %p800_p5 = pnand %p966_p2, %p799_p4  ;;  %266 = sbr.rel (%p970_p3) target bundleno = 487 (0x1e7), region = 48 }
   0xb   : > { %802 = dma.hbm_to_vmem [thread:$0]  (!%p800_p5), %s220_s27, 1024, %s222_s9, [#allocation3], %s913_s15, %s913_s15, %s914_s16  }
   0xc   : > { %805 = dma.hbm_to_vmem [thread:$0]  (!%p800_p5), %s237_s12, 1024, %s239_s14, [#allocation5], %s913_s15, %s913_s15, %s914_s16  }
   0xe   : > { %900 = dma.done.wait (%p966_p2), [#allocation3], 1024  }
   0xf   : > { %902 = vsyncadd (%p966_p2), [#allocation3], 4294966272 }
  0x10   : > { %904 = dma.done.wait (%p966_p2), [#allocation5], 1024  }
  0x11   : > { %906 = vsyncadd (%p966_p2), [#allocation5], 4294966272  ;;  %s304_s17 = smul.u32 5, %s672_s28  ;;  %v766_v0 = vld [vmem:[%s1025_s1] sm:$0xff]  ;;  %vm347_vm0 = vcmask 130048   ;;  %v774_v2 = vld [vmem:[#allocation2 + $0x38] sm:$0xff] }
  0x12   : > { %364 = vmatpush.bf16.msra.mxu0 %v766_v0  ;;  %456 = vmatpush.bf16.msra.mxu1 %v774_v2  ;;  %v773_v3 = vld [vmem:[#allocation2 + $0x30] sm:$0xff]  ;;  %v772_v4 = vld [vmem:[#allocation2 + $0x28] sm:$0xff]  ;;  %v771_v5 = vld [vmem:[#allocation2 + $0x20] sm:$0xff]  ;;  %vm588_vm1 = vcmask 31744  }
  0x13   : > { %p305_p6 = scmp.lt.s32.totalorder %s304_s17, 9  ;;  %783 = vmatpush.bf16.msra.mxu3 %v774_v2  ;;  %v770_v10 = vld [vmem:[#allocation2 + $0x18] sm:$0xff]  ;;  %v769_v11 = vld [vmem:[#allocation2 + $0x10] sm:$0xff]  ;;  %v768_v12 = vld [vmem:[#allocation2 + $0x8] sm:$0xff] }
  0x14   : > { %v767_v13 = vld [vmem:[#allocation2] sm:$0xff]  ;;  %v782_v22 = vld [vmem:[#allocation4 + $0x38] sm:$0xff]  ;;  %v781_v24 = vld [vmem:[#allocation4 + $0x30] sm:$0xff] }
  0x15   : > { %s1035_s17 = smov (!%p305_p6, %s304_s17), 9  ;;  %v822_v15 = vld [vmem:[%s1026_s2] ss:$0 sm:$0xff]  ;;  %555 = vmatpush.bf16.msra.mxu2 %v782_v22  ;;  %v780_v25 = vld [vmem:[#allocation4 + $0x28] sm:$0xff]  ;;  %v778_v38 = vld [vmem:[#allocation4 + $0x18] sm:$0xff] }
  0x16   : > { %s681_s18 = sshll.u32 %s1035_s17, 2  ;;  %457 = vmatpush.bf16.msra.mxu1 %v773_v3  ;;  %v779_v29 = vld [vmem:[#allocation4 + $0x20] sm:$0xff]  ;;  %v777_v39 = vld [vmem:[#allocation4 + $0x10] sm:$0xff]  ;;  %v776_v40 = vld [vmem:[#allocation4 + $0x8] sm:$0xff]  ;;  %s682_s8 = sshll.u32 %s1035_s17, 3 }
  0x17   : > { %s308_s23 = scalar_lea.vmem %s1024_s0, %s681_s18  ;;  %784 = vmatpush.bf16.msra.mxu3 %v773_v3  ;;  %v775_v41 = vld [vmem:[#allocation4] sm:$0xff]  ;;  %s314_s11 = scalar_lea.vmem %s1031_s7, %s682_s8 }
  0x18   : > { %v764_v1 = vld [vmem:[%s308_s23] sm:$0xff]  ;;  %v765_v6 = vld [vmem:[%s308_s23 + $0x8] sm:$0xff]  ;;  %v321_v7 = vld [vmem:[%s308_s23 + $0x10] sm:$0xf] }
  0x19   : > { %695 = vmatmul.msk.bf16.vlgmr.msra.gmra.mxu0 %vm347_vm0, %v764_v1  ;;  %v337_v8 = vunpack.c.l.b16 %v321_v7  ;;  %556 = vmatpush.bf16.msra.mxu2 %v781_v24  ;;  %v823_v43 = vld [vmem:[%s1028_s4] ss:$0 sm:$0xff] }
  0x1a   : > { %458 = vmatpush.bf16.msra.mxu1 %v772_v4  ;;  %v824_v62 = vld [vmem:[%s1030_s6] ss:$0 sm:$0xff] }
  0x1b   : > { %785 = vmatpush.bf16.msra.mxu3 %v772_v4  ;;  %v340_v9 = vpack.c.b16 %v337_v8, %v337_v8 }
  0x1d   : > { %557 = vmatpush.bf16.msra.mxu2 %v780_v25 }
  0x1e   : > { %459 = vmatpush.bf16.msra.mxu1 %v771_v5 }
  0x1f   : > { %786 = vmatpush.bf16.msra.mxu3 %v771_v5 }
  0x21   : > { %558 = vmatpush.bf16.msra.mxu2 %v779_v29 }
  0x22   : > { %460 = vmatpush.bf16.msra.mxu1 %v770_v10 }
  0x23   : > { %787 = vmatpush.bf16.msra.mxu3 %v770_v10 }
  0x25   : > { %559 = vmatpush.bf16.msra.mxu2 %v778_v38 }
  0x26   : > { %461 = vmatpush.bf16.msra.mxu1 %v769_v11 }
  0x27   : > { %788 = vmatpush.bf16.msra.mxu3 %v769_v11 }
  0x29   : > { %696 = vmatmul.msk.bf16.gmra.mxu0 %vm347_vm0, %v765_v6  ;;  %560 = vmatpush.bf16.msra.mxu2 %v777_v39 }
  0x2a   : > { %462 = vmatpush.bf16.msra.mxu1 %v768_v12 }
  0x2b   : > { %789 = vmatpush.bf16.msra.mxu3 %v768_v12 }
  0x2d   : > { %561 = vmatpush.bf16.msra.mxu2 %v776_v40 }
  0x2e   : > { %463 = vmatpush.bf16.msra.mxu1 %v767_v13 }
  0x2f   : > { %790 = vmatpush.bf16.msra.mxu3 %v767_v13 }
  0x31   : > { %562 = vmatpush.bf16.msra.mxu2 %v775_v41 }
  0x39   : > { %697 = vmatmul.msk.bf16.gmra.mxu0 %vm347_vm0, %v340_v9 }
  0x96   : > { %v366_v14 = vpop.f32.mrf.mxu0 }
  0x97   : > { %v367_v16 = vadd.f32 %v822_v15, %v366_v14 }
  0x99   : > { %v380_v19 = vmax.f32 %v367_v16, 0.0 }
  0x9e   : > { %v368_v17 = vpop.f32.mrf.mxu0 }
  0x9f   : > { %v369_v18 = vadd.f32 %v822_v15, %v368_v17 }
  0xa1   : > { %v381_v20 = vmax.f32 %v369_v18, 0.0 }
  0xa3   : > { %v385_v21 = vpack.c.bf16 %v381_v20, %v380_v19 }
  0xa5   : > { %464 = vmatmul.bf16.vlgmr.msra.gmra.mxu1 %v385_v21 }
  0xa6   : > { %v371_v23 = vpop.f32.mrf.mxu0 }
  0xa7   : > { %v372_v26 = vadd.f32 %v822_v15, %v371_v23 }
  0xa9   : > { %v382_v30 = vmax.f32 %v372_v26, 0.0 }
  0xae   : > { %v373_v27 = vpop.f32.mrf.mxu0 }
  0xaf   : > { %v374_v28 = vadd.f32 %v822_v15, %v373_v27 }
  0xb1   : > { %v383_v31 = vmax.f32 %v374_v28, 0.0 }
  0xb3   : > { %v386_v32 = vpack.c.bf16 %v383_v31, %v382_v30 }
  0xb5   : > { %469 = vmatmul.bf16.vlgmr.msra.gmra.mxu3 %v386_v32 }
  0xb6   : > { %v376_v33 = vpop.f32.mrf.mxu0 }
  0xb7   : > { %v377_v34 = vadd.f32 %v822_v15, %v376_v33 }
  0xb9   : > { %v384_v35 = vmax.f32 %v377_v34, 0.0 }
  0xbb   : > { %v387_v37 = vpack.c.bf16 %v384_v35, %v384_v35 }
  0xbe   : > { %v378_v36 = vpop.f32.mrf.mxu0 }
  0xc5   : > { %474 = vmatmul.bf16.gmra.mxu3 %v387_v37 }
 0x122   : > { %v465_v42 = vpop.f32.mrf.mxu1 }
 0x123   : > { %v466_v44 = vadd.f32 %v823_v43, %v465_v42 }
 0x125   : > { %v479_v47 = vmax.f32 %v466_v44, 0.0 }
 0x12a   : > { %v467_v45 = vpop.f32.mrf.mxu1 }
 0x12b   : > { %v468_v46 = vadd.f32 %v823_v43, %v467_v45 }
 0x12d   : > { %v480_v48 = vmax.f32 %v468_v46, 0.0 }
 0x12f   : > { %v484_v49 = vpack.c.bf16 %v480_v48, %v479_v47 }
 0x131   : > { %563 = vmatmul.bf16.vlgmr.msra.gmra.mxu2 %v484_v49 }
 0x138   : > { %v470_v50 = vpop.f32.mrf.mxu3 }
 0x139   : > { %v471_v51 = vadd.f32 %v823_v43, %v470_v50 }
 0x13b   : > { %v481_v54 = vmax.f32 %v471_v51, 0.0 }
 0x140   : > { %v472_v52 = vpop.f32.mrf.mxu3 }
 0x141   : > { %v473_v53 = vadd.f32 %v823_v43, %v472_v52 }
 0x143   : > { %v482_v55 = vmax.f32 %v473_v53, 0.0 }
 0x145   : > { %v485_v56 = vpack.c.bf16 %v482_v55, %v481_v54 }
 0x147   : > { %568 = vmatmul.bf16.gmra.mxu2 %v485_v56 }
 0x148   : > { %v475_v57 = vpop.f32.mrf.mxu3 }
 0x149   : > { %v476_v58 = vadd.f32 %v823_v43, %v475_v57 }
 0x14b   : > { %v483_v59 = vmax.f32 %v476_v58, 0.0 }
 0x14d   : > { %v486_v61 = vpack.c.bf16 %v483_v59, %v483_v59 }
 0x150   : > { %v477_v60 = vpop.f32.mrf.mxu3 }
 0x157   : > { %573 = vmatmul.bf16.gmra.mxu2 %v486_v61 }
 0x1b4   : > { %v564_v63 = vpop.f32.mrf.mxu2 }
 0x1b5   : > { %v565_v0 = vadd.f32 %v824_v62, %v564_v63 }
 0x1b7   : > { %825 = vtanh.f32 %v565_v0 }
 0x1bc   : > { %v566_v1 = vpop.f32.mrf.mxu2 }
 0x1bd   : > { %v826_v2 = vpop.eup %825  ;;  %v567_v3 = vadd.f32 %v824_v62, %v566_v1 }
 0x1be   : > { %v583_v4 = vmul.f32 2.0, %v826_v2 }
 0x1bf   : > { %827 = vtanh.f32 %v567_v3 }
 0x1c0   : > { %589 = vst.msk [vmem:[%s314_s11] sm:$0xff] %vm588_vm1, %v583_v4 }
 0x1c5   : > { %v828_v5 = vpop.eup %827 }
 0x1c6   : > { %v584_v6 = vmul.f32 2.0, %v828_v5 }
 0x1c8   : > { %590 = vst.msk [vmem:[%s314_s11 + $0x8] sm:$0xff] %vm588_vm1, %v584_v6 }
 0x1ca   : > { %v569_v7 = vpop.f32.mrf.mxu2 }
 0x1cb   : > { %v570_v8 = vadd.f32 %v824_v62, %v569_v7 }
 0x1cd   : > { %829 = vtanh.f32 %v570_v8 }
 0x1d2   : > { %v571_v9 = vpop.f32.mrf.mxu2 }
 0x1d3   : > { %v830_v10 = vpop.eup %829  ;;  %v572_v11 = vadd.f32 %v824_v62, %v571_v9 }
 0x1d4   : > { %v585_v12 = vmul.f32 2.0, %v830_v10 }
 0x1d5   : > { %831 = vtanh.f32 %v572_v11 }
 0x1d6   : > { %591 = vst.msk [vmem:[%s314_s11 + $0x10] sm:$0xff] %vm588_vm1, %v585_v12 }
 0x1da   : > { %v574_v13 = vpop.f32.mrf.mxu2 }
 0x1db   : > { %v832_v14 = vpop.eup %831  ;;  %v575_v15 = vadd.f32 %v824_v62, %v574_v13 }
 0x1dc   : > { %v586_v16 = vmul.f32 2.0, %v832_v14 }
 0x1dd   : > { %833 = vtanh.f32 %v575_v15 }
 0x1de   : > { %592 = vst.msk [vmem:[%s314_s11 + $0x18] sm:$0xff] %vm588_vm1, %v586_v16 }
 0x1e2   : > { %v576_v17 = vpop.f32.mrf.mxu2 }
 0x1e3   : > { %v834_v18 = vpop.eup %833 }
 0x1e4   : > { %v587_v19 = vmul.f32 2.0, %v834_v18 }
 0x1e6   : > { %593 = vst.msk [vmem:[%s314_s11 + $0x20] sm:$0xff] %vm588_vm1, %v587_v19 }
 0x1e7 PF: > { %s19_s24 = sadd.s32 1, %s909_s24  }
 0x1e8   : > { %p16_p7 = scmp.ge.s32.totalorder %s19_s24, 4  }
 0x1ea   :  { %18 = sbr.rel (!%p16_p7) target bundleno = 2 (0x2), region = 87 }
 0x1ef   :  { %616 = vsyncpa [#allocation3], 1 }
 0x1f0   :  { %618 = vsyncpa [#allocation3 + $0x1], 1 }
 0x1f1   :  { %619 = vsyncpa [#allocation5], 1 }

</bundles_post_ra>
